<compile_context>
chip_gen: v7x
topology: tpu7x:2x2x1
jax: 0.10.0
libtpu: 0.0.40
codegen_flags: <defaults>
</compile_context>

<pallas_src>
import functools

import jax
import jax.numpy as jnp
from jax.experimental import pallas as pl
from jax.experimental.pallas import tpu as pltpu


def _tcn_kernel(x_ref, gamma_ref, beta_ref, o_ref, *, eps):
    # x_ref: (BB, T, Ft) block; gamma_ref / beta_ref: (1, Ft).
    x = x_ref[...].astype(jnp.float32)
    gamma = gamma_ref[...].astype(jnp.float32)[:, None, :]   # (1, 1, Ft), hoisted
    beta = beta_ref[...].astype(jnp.float32)[:, None, :]     # (1, 1, Ft), hoisted

    mean = jnp.mean(x, axis=1, keepdims=True)                 # (BB, 1, Ft)
    centered = x - mean
    var = jnp.mean(centered * centered, axis=1, keepdims=True)  # biased variance
    scale = gamma * jax.lax.rsqrt(var + eps)                  # (BB, 1, Ft)

    # (x - mean) * (gamma * inv_std) + beta : one mul + one add per element.
    o_ref[...] = (centered * scale + beta).astype(o_ref.dtype)


# Per-block VMEM target. Input + output blocks, each double-buffered, is
# ~4x this (~8 MiB) — fits the v5e 16 MiB scoped default and v7x's 64 MiB VMEM.
_TARGET_BLOCK_BYTES = 2 * 1024 * 1024


def _tcn_pallas(x, gamma2d, beta2d, *, eps):
    B, T, F = x.shape
    itemsize = jnp.dtype(x.dtype).itemsize

    # Feature tile: full F when it is not lane-aligned (full-dim blocks are
    # always legal); otherwise a multiple of 128 sized to the VMEM budget.
    if F % 128 == 0 and F > 128:
        max_f = max(128, ((_TARGET_BLOCK_BYTES // (T * itemsize)) // 128) * 128)
        block_f = int(min(F, max_f))
    else:
        block_f = F

    # Batch tile: pack as many rows per grid step as the budget allows so the
    # fixed per-step overhead is amortized over a large lane-dense slab.
    # NOTE: the full T extent must fit in one block (single-pass reduction).
    bytes_per_batch = max(1, T * block_f * itemsize)
    block_b = int(max(1, min(B, _TARGET_BLOCK_BYTES // bytes_per_batch)))

    grid = (pl.cdiv(B, block_b), pl.cdiv(F, block_f))
    kernel = functools.partial(_tcn_kernel, eps=eps)

    return pl.pallas_call(
        kernel,
        out_shape=jax.ShapeDtypeStruct((B, T, F), x.dtype),
        grid_spec=pltpu.PrefetchScalarGridSpec(
            num_scalar_prefetch=0,
            grid=grid,
            in_specs=[
                pl.BlockSpec((block_b, T, block_f), lambda i, j: (i, 0, j)),
                pl.BlockSpec((1, block_f), lambda i, j: (0, j)),
                pl.BlockSpec((1, block_f), lambda i, j: (0, j)),
            ],
            out_specs=pl.BlockSpec((block_b, T, block_f), lambda i, j: (i, 0, j)),
        ),
        compiler_params=pltpu.CompilerParams(
            dimension_semantics=("parallel", "parallel"),
            vmem_limit_bytes=32 * 1024 * 1024,
        ),
    )(x, gamma2d, beta2d)


def temporal_context_norm(x, gamma=None, beta=None, *, eps=1e-5):
    """x: (B, T, F); gamma, beta: (F,) (None => affine identity). Returns (B, T, F)."""
    B, T, F = x.shape
    if gamma is None:
        gamma = jnp.ones((F,), x.dtype)
    if beta is None:
        beta = jnp.zeros((F,), x.dtype)
    eps = float(eps)

    # Lane-density for small / unaligned F: pack G batch elements along the
    # lane axis so vector stores are (closer to) full-width. The per-(b, f)
    # reduction over T is unchanged; gamma/beta are tiled to match.
    G = 1
    if F % 128 != 0 and B > 1:
        best = 1
        for g in range(1, B + 1):
            if B % g != 0:
                continue
            if g * F > 4096:          # cap packed lane width
                break
            best = g
            if (g * F) % 128 == 0:    # first fully lane-aligned packing wins
                break
        G = best

    if G > 1:
        Bp = B // G
        xp = x.reshape(Bp, G, T, F).transpose(0, 2, 1, 3).reshape(Bp, T, G * F)
        gp = jnp.tile(gamma, G).reshape(1, G * F)
        bp = jnp.tile(beta, G).reshape(1, G * F)
        out = _tcn_pallas(xp, gp, bp, eps=eps)
        return out.reshape(Bp, T, G, F).transpose(0, 2, 1, 3).reshape(B, T, F)

    return _tcn_pallas(x, gamma.reshape(1, F), beta.reshape(1, F), eps=eps)


def _reference(x, gamma, beta, eps=1e-5):
    mean = jnp.mean(x, axis=-2, keepdims=True)
    var = jnp.mean((x - mean) ** 2, axis=-2, keepdims=True)
    x_norm = (x - mean) / jnp.sqrt(var + eps)
    return x_norm * gamma + beta


# TODO(synk): the module's inverse() method (de-normalization using cached
# mean/var) is not part of forward() and is not implemented here.

if __name__ == "__main__":
    key = jax.random.PRNGKey(0)
    k1, k2, k3 = jax.random.split(key, 3)

    # Config 1: small shapes consistent with the module; gamma/beta as in
    # reset_parameters() (ones / zeros). F=32 exercises the lane-packing path.
    B, T, F = 2, 8, 32
    x = jax.random.normal(k1, (B, T, F), dtype=jnp.float32)
    gamma = jnp.ones((F,), dtype=jnp.float32)
    beta = jnp.zeros((F,), dtype=jnp.float32)

    out = jax.block_until_ready(temporal_context_norm(x, gamma, beta, eps=1e-5))
    ref = _reference(x, gamma, beta, eps=1e-5)
    assert out.shape == (B, T, F)
    assert jnp.allclose(out, ref, atol=1e-5, rtol=1e-5), "mismatch vs reference (config 1)"

    # Config 2: lane-aligned F with a non-trivial affine, exercises the
    # direct (non-packed) path with multiple batch rows per block.
    B2, T2, F2 = 4, 16, 128
    x2 = jax.random.normal(k2, (B2, T2, F2), dtype=jnp.float32)
    g2 = 1.0 + 0.1 * jax.random.normal(k3, (F2,), dtype=jnp.float32)
    b2 = 0.01 * jnp.arange(F2, dtype=jnp.float32)
    out2 = jax.block_until_ready(temporal_context_norm(x2, g2, b2, eps=1e-5))
    ref2 = _reference(x2, g2, b2, eps=1e-5)
    assert jnp.allclose(out2, ref2, atol=1e-4, rtol=1e-4), "mismatch vs reference (config 2)"

    print("KERNEL_OK")
</pallas_src>

<mosaic_0001>
module attributes {stable_mosaic.version = 11 : i64} {
  func.func @_tcn_kernel(%arg0: i32, %arg1: i32, %arg2: memref<1x8x64xf32, #tpu.memory_space<vmem>>, %arg3: memref<1x64xf32, #tpu.memory_space<vmem>>, %arg4: memref<1x64xf32, #tpu.memory_space<vmem>>, %arg5: memref<1x8x64xf32, #tpu.memory_space<vmem>>) attributes {dimension_semantics = [#tpu.dimension_semantics<parallel>, #tpu.dimension_semantics<parallel>], iteration_bounds = array<i64: 1, 1>, scalar_prefetch = 0 : i64, scratch_operands = 0 : i64, tpu.core_type = #tpu.core_type<tc>, window_params = [{transform_indices = @transform_0, window_bounds = array<i64: 1, 8, 64>}, {transform_indices = @transform_1, window_bounds = array<i64: 1, 64>}, {transform_indices = @transform_2, window_bounds = array<i64: 1, 64>}, {transform_indices = @transform_3, window_bounds = array<i64: 1, 8, 64>}]} {
    %c0 = arith.constant 0 : index
    %c0_0 = arith.constant 0 : index
    %c0_1 = arith.constant 0 : index
    %0 = vector.load %arg2[%c0, %c0_0, %c0_1] : memref<1x8x64xf32, #tpu.memory_space<vmem>>, vector<1x8x64xf32>
    %c0_2 = arith.constant 0 : index
    %c0_3 = arith.constant 0 : index
    %1 = vector.load %arg3[%c0_2, %c0_3] : memref<1x64xf32, #tpu.memory_space<vmem>>, vector<1x64xf32>
    %2 = vector.shape_cast %1 : vector<1x64xf32> to vector<1x1x64xf32>
    %c0_4 = arith.constant 0 : index
    %c0_5 = arith.constant 0 : index
    %3 = vector.load %arg4[%c0_4, %c0_5] : memref<1x64xf32, #tpu.memory_space<vmem>>, vector<1x64xf32>
    %4 = vector.shape_cast %3 : vector<1x64xf32> to vector<1x1x64xf32>
    %cst = arith.constant dense<0.000000e+00> : vector<1x64xf32>
    %5 = vector.multi_reduction <add>, %0, %cst [1] : vector<1x8x64xf32> to vector<1x64xf32>
    %6 = vector.shape_cast %5 : vector<1x64xf32> to vector<1x1x64xf32>
    %cst_6 = arith.constant 8.000000e+00 : f32
    %7 = vector.broadcast %cst_6 : f32 to vector<1x1x64xf32>
    %8 = arith.divf %6, %7 : vector<1x1x64xf32>
    %9 = vector.broadcast %8 : vector<1x1x64xf32> to vector<1x8x64xf32>
    %10 = arith.subf %0, %9 : vector<1x8x64xf32>
    %11 = arith.mulf %10, %10 : vector<1x8x64xf32>
    %cst_7 = arith.constant dense<0.000000e+00> : vector<1x64xf32>
    %12 = vector.multi_reduction <add>, %11, %cst_7 [1] : vector<1x8x64xf32> to vector<1x64xf32>
    %13 = vector.shape_cast %12 : vector<1x64xf32> to vector<1x1x64xf32>
    %cst_8 = arith.constant 8.000000e+00 : f32
    %14 = vector.broadcast %cst_8 : f32 to vector<1x1x64xf32>
    %15 = arith.divf %13, %14 : vector<1x1x64xf32>
    %cst_9 = arith.constant 9.99999974E-6 : f32
    %16 = vector.broadcast %cst_9 : f32 to vector<1x1x64xf32>
    %17 = arith.addf %15, %16 : vector<1x1x64xf32>
    %18 = math.rsqrt %17 : vector<1x1x64xf32>
    %19 = arith.mulf %2, %18 : vector<1x1x64xf32>
    %20 = vector.broadcast %19 : vector<1x1x64xf32> to vector<1x8x64xf32>
    %21 = arith.mulf %10, %20 : vector<1x8x64xf32>
    %22 = vector.broadcast %4 : vector<1x1x64xf32> to vector<1x8x64xf32>
    %23 = arith.addf %21, %22 : vector<1x8x64xf32>
    %c0_10 = arith.constant 0 : index
    %c0_11 = arith.constant 0 : index
    %c0_12 = arith.constant 0 : index
    %24 = vector.load %arg5[%c0_10, %c0_11, %c0_12] : memref<1x8x64xf32, #tpu.memory_space<vmem>>, vector<1x8x64xf32>
    tpu.vector_store %arg5[%c0_10, %c0_11, %c0_12], %23 {strides = array<i32>} : memref<1x8x64xf32, #tpu.memory_space<vmem>>, vector<1x8x64xf32>,
    return
  }
  func.func @transform_0(%arg0: i32, %arg1: i32) -> (i32, i32, i32) {
    %c0_i32 = arith.constant 0 : i32
    %c0_i32_0 = arith.constant 0 : i32
    return %arg0, %c0_i32, %arg1 : i32, i32, i32
  }
  func.func @transform_1(%arg0: i32, %arg1: i32) -> (i32, i32) {
    %c0_i32 = arith.constant 0 : i32
    %c0_i32_0 = arith.constant 0 : i32
    return %c0_i32, %arg1 : i32, i32
  }
  func.func @transform_2(%arg0: i32, %arg1: i32) -> (i32, i32) {
    %c0_i32 = arith.constant 0 : i32
    %c0_i32_0 = arith.constant 0 : i32
    return %c0_i32, %arg1 : i32, i32
  }
  func.func @transform_3(%arg0: i32, %arg1: i32) -> (i32, i32, i32) {
    %c0_i32 = arith.constant 0 : i32
    %c0_i32_0 = arith.constant 0 : i32
    return %arg0, %c0_i32, %arg1 : i32, i32, i32
  }
}

</mosaic_0001>

<bundles_post_ra>
// kernel: tpu_custom_call.1
= control target key start
LH: loop header
LB: loop body
LE: loop exit
PB: predicated region body
PF: predicated region fallthrough
CT: control target
= control target key end

     0   :  { %8 = vsyncpa [#allocation3], 0  ;;  %s191_s0 = inlined_call_operand.hbm [shape: f32[1,8,64], index: 0, kind: input, shape index: {}]   ;;  %s192_s1 = inlined_call_operand.vmem [shape: f32[1,64], index: 1, kind: input, shape index: {}]   ;;  %s193_s2 = inlined_call_operand.vmem [shape: f32[1,64], index: 2, kind: input, shape index: {}]   ;;  %s194_s3 = inlined_call_operand.hbm [shape: f32[1,8,64], index: 3, kind: output, shape index: {}]  }
   0x1   :  { %9 = vsyncpa [#allocation4], 0  ;;  %s136_s12 = smov [#allocation2]   ;;  %s88_s16 = scalar_lea.hbm %s191_s0, 128 }
   0x2   :  { %s16_s13 = sshll.u32 %s136_s12, 4  ;;  %p89_p0 = scmp.ne.s32.totalorder %s191_s0, %s88_s16  ;;  %s17_s13 = int_to_ptr.vmem [resolvable:$true] %s16_s13 }
   0x3   :  { %p92_p1 = scmp.lt.u32.totalorder %s88_s16, %s191_s0 }
   0x5   :  { %p94_p2 = pnand %p92_p1, %p89_p0 }
   0x7   :  { %97 = shalt.err (!%p94_p2)
}
   0x8   :  { %s98_s21 = scalar_lea.vmem %s17_s13, 128  ;;  %p103_p4 = scmp.lt.s32.totalorder %s17_s13, %s17_s13 }
   0x9   :  { %p99_p3 = scmp.ne.s32.totalorder %s17_s13, %s98_s21  ;;  %p104_p5 = scmp.lt.s32.totalorder %s98_s21, %s98_s21 }
   0xb   :  { %p105_p6 = por %p104_p5, %p103_p4 }
   0xd   :  { %p106_p7 = pnand %p105_p6, %p99_p3 }
   0xf   :  { %109 = shalt.err (!%p106_p7)
}
  0x10   :  { %19 = dma.hbm_to_vmem [thread:$0]  %s191_s0, 128, %s17_s13, [#allocation3]  }
  0x11   :  { %132 = dma.done.wait [#allocation3], 128  }
  0x12   :  { %133 = vsyncadd [#allocation3], 4294967168  ;;  %vm30_vm0 = vcmask 523264   ;;  %v27_v0 = vld [vmem:[#allocation2] sm:$0xff]  ;;  %v54_v20 = vlaneseq  ;;  %s137_s27 = smov [#allocation5]  }
  0x13   :  { %v31_v1 = vsel %vm30_vm0, %v27_v0, 0.0  ;;  %v28_v22 = vld [vmem:[%s192_s1] sm:$0x1]  ;;  %s74_s28 = sshll.u32 %s137_s27, 4  ;;  %s75_s28 = int_to_ptr.vmem [resolvable:$true] %s74_s28 }
  0x14   :  { %v32_v2 = vrot.slane %v31_v1, 4  ;;  %v55_v21 = vshrl.u32 %v54_v20, 7  ;;  %v83_v27 = vld [vmem:[%s193_s2] ss:$0 sm:$0xff]  ;;  %s110_s29 = scalar_lea.vmem %s75_s28, 128  ;;  %p115_p9 = scmp.lt.s32.totalorder %s75_s28, %s75_s28 }
  0x15   :  { %p111_p8 = scmp.ne.s32.totalorder %s75_s28, %s110_s29  ;;  %p116_p10 = scmp.lt.s32.totalorder %s110_s29, %s110_s29 }
  0x16   :  { %v33_v3 = vadd.f32 %v32_v2, %v31_v1  ;;  %v56_v23 = vsub.s32 0, %v55_v21 }
  0x17   :  { %p117_p11 = por %p116_p10, %p115_p9 }
  0x18   :  { %v34_v4 = vrot.slane %v33_v3, 2 }
  0x19   :  { %p118_p12 = pnand %p117_p11, %p111_p8 }
  0x1a   :  { %v35_v5 = vadd.f32 %v34_v4, %v33_v3 }
  0x1c   :  { %v36_v6 = vrot.slane %v35_v5, 1 }
  0x1e   :  { %v37_v7 = vadd.f32 %v36_v6, %v35_v5 }
  0x20   :  { %v39_v8 = vmul.f32 0.125, %v37_v7 }
  0x22   :  { %v40_v9 = vsub.f32 %v27_v0, %v39_v8 }
  0x24   :  { %v41_v10 = vmul.f32 %v40_v9, %v40_v9 }
  0x26   :  { %v42_v11 = vsel %vm30_vm0, %v41_v10, 0.0 }
  0x27   :  { %v43_v12 = vrot.slane %v42_v11, 4 }
  0x29   :  { %v44_v13 = vadd.f32 %v43_v12, %v42_v11 }
  0x2b   :  { %v45_v14 = vrot.slane %v44_v13, 2 }
  0x2d   :  { %v46_v15 = vadd.f32 %v45_v14, %v44_v13 }
  0x2f   :  { %v47_v16 = vrot.slane %v46_v15, 1 }
  0x31   :  { %v48_v17 = vadd.f32 %v47_v16, %v46_v15 }
  0x33   :  { %v49_v18 = vmul.f32 0.125, %v48_v17 }
  0x35   :  { %v50_v19 = vadd.f32 1e-05, %v49_v18 }
  0x37   :  { %86 = vrsqrt.f32 %v50_v19 }
  0x41   :  { %v87_v24 = vpop.eup %86 }
  0x42   :  { %v52_v25 = vmul.f32 %v87_v24, %v28_v22 }
  0x44   :  { %v57_v26 = vrot.slane %v52_v25, %v56_v23 }
  0x46   :  { %v59_v28 = vmul.f32 %v57_v26, %v40_v9 }
  0x48   :  { %v66_v29 = vadd.f32 %v83_v27, %v59_v28 }
  0x4a   :  { %67 = vst.msk [vmem:[#allocation5] sm:$0xff] %vm30_vm0, %v66_v29 }
  0x4b   :  { %121 = shalt.err (!%p118_p12)
}
  0x4c   :  { %s122_s4 = scalar_lea.hbm %s194_s3, 128 }
  0x4d   :  { %p123_p13 = scmp.ne.s32.totalorder %s194_s3, %s122_s4  ;;  %p126_p0 = scmp.lt.u32.totalorder %s122_s4, %s194_s3 }
  0x4f   :  { %p128_p1 = pnand %p126_p0, %p123_p13 }
  0x51   :  { %131 = shalt.err (!%p128_p1)
}
  0x52   :  { %77 = dma.vmem_to_hbm [thread:$0]  %s75_s28, 128, %s194_s3, [#allocation4]  }
  0x53   :  { %134 = dma.done.wait [#allocation4], 128  }
  0x54   :  { %135 = vsyncadd [#allocation4], 4294967168 }
  0x55   :  { %81 = vsyncpa [#allocation3], 1 }
  0x56   :  { %82 = vsyncpa [#allocation4], 1 }

</bundles_post_ra>
